<compile_context>
chip_gen: v5e
topology: v5e:2x2
jax: 0.10.0
libtpu: 0.0.40
codegen_flags: <defaults>
</compile_context>

<pallas_src>
import jax
import jax.numpy as jnp
from jax.experimental import pallas as pl
from jax.experimental.pallas import tpu as pltpu


def _mul_kernel(w_ref, x_ref, o_ref):
    # w_ref: (1, 1) f32 scalar in SMEM; x_ref/o_ref: lane-dense VMEM tiles.
    o_ref[...] = (x_ref[...] * w_ref[0, 0]).astype(o_ref.dtype)


_FAST_PATH_BYTES = 64 * 1024          # below this, plain XLA mul is strictly cheaper
_TARGET_TILE_BYTES = 8 * 1024 * 1024  # ~8 MiB tiles: ~86% of HBM roofline on v6e and
                                      # big enough that v7x's 3.2 TB/s HBM still
                                      # amortizes the fixed per-step overhead;
                                      # 4x tile + headroom stays well under
                                      # v7x's 64 MiB/TC physical VMEM.


def _round_up(a: int, b: int) -> int:
    return ((a + b - 1) // b) * b


def mul_pallas(x: jax.Array, weight) -> jax.Array:
    """Elementwise scalar multiply via a Pallas TPU kernel: returns x * weight."""
    orig_shape = x.shape
    dtype = x.dtype
    n = x.size
    itemsize = jnp.dtype(dtype).itemsize

    # Integer / non-float dtypes: defer to XLA with standard type promotion
    # (casting a fractional weight to int would silently multiply by 0).
    if not jnp.issubdtype(dtype, jnp.floating):
        return x * weight

    # PyTorch semantics for the float ResNet use case: float x * python float -> x.dtype.
    w_cast = jnp.asarray(weight, dtype=dtype)

    # Fast path: tiny tensors are not worth a kernel launch.
    if n * itemsize < _FAST_PATH_BYTES:
        return x * w_cast

    # Sublane packing: (8,128) f32, (16,128) bf16, (32,128) int8/fp8.
    sublane = {4: 8, 2: 16, 1: 32}.get(itemsize, 8)

    # Widest lane (last) dim that divides the element count exactly.
    lane = 128
    for cand in (4096, 2048, 1024, 512, 256, 128):
        if n % cand == 0:
            lane = cand
            break

    # No pad/slice passes over HBM: kernel handles the largest lane-divisible
    # prefix; the (< lane)-element tail, if any, is handled by plain jnp below.
    n_main = (n // lane) * lane
    x_flat = x.reshape(-1)
    rows = n_main // lane
    x2d = x_flat[:n_main].reshape(rows, lane)

    # ~8 MiB row-tiles, multiple of the sublane packing.
    block_rows = min(rows, max(sublane, _TARGET_TILE_BYTES // (lane * itemsize)))
    if rows >= sublane:
        block_rows = max(sublane, (block_rows // sublane) * sublane)
        # Guarantee >=2 balanced grid steps when the slab is splittable so the
        # "parallel" grid axis can be sharded across v7x's 2 TensorCores.
        if rows >= 2 * sublane:
            half = _round_up(-(-rows // 2), sublane)
            block_rows = min(block_rows, half)
    else:
        block_rows = rows  # tiny row count: block equals the full dim (legal).

    grid = (pl.cdiv(rows, block_rows),)

    # Explicit scoped-VMEM budget: 2x in + 2x out double buffers + ~2 MiB headroom,
    # so the 8 MiB tiles compile on v5e (16 MiB default limit) and v6e/v7x (32 MiB).
    tile_bytes = block_rows * lane * itemsize
    vmem_limit = max(16 * 1024 * 1024, 4 * tile_bytes + 2 * 1024 * 1024)

    # Weight as a 32-bit SMEM scalar (SMEM is 32-bit scalar memory).
    w = jnp.asarray(weight, dtype=jnp.float32).reshape(1, 1)

    out2d = pl.pallas_call(
        _mul_kernel,
        out_shape=jax.ShapeDtypeStruct((rows, lane), dtype),
        grid_spec=pl.GridSpec(
            grid=grid,
            in_specs=[
                pl.BlockSpec(memory_space=pltpu.SMEM),               # weight scalar
                pl.BlockSpec((block_rows, lane), lambda i: (i, 0)),  # x tile
            ],
            out_specs=pl.BlockSpec((block_rows, lane), lambda i: (i, 0)),
        ),
        compiler_params=pltpu.CompilerParams(
            dimension_semantics=("parallel",),  # v7x: shard grid across 2 TCs
            vmem_limit_bytes=vmem_limit,
        ),
    )(w, x2d)

    out_flat = out2d.reshape(-1)
    if n_main < n:
        # Sub-lane tail (< 128 elements): handled in plain JAX, no extra full-array pass.
        tail = x_flat[n_main:] * w_cast
        out_flat = jnp.concatenate([out_flat, tail])
    return out_flat.reshape(orig_shape)


if __name__ == "__main__":
    weight = 0.2

    # Small NCHW input consistent with a ResNet-style Mul layer (fast path).
    x = jax.random.normal(jax.random.PRNGKey(0), (2, 4, 16, 16), dtype=jnp.float32)
    y = jax.block_until_ready(mul_pallas(x, weight))
    assert y.shape == x.shape and y.dtype == x.dtype
    assert jnp.allclose(y, x * jnp.float32(weight), atol=1e-6, rtol=1e-6)

    # Large enough to exercise the Pallas path (lane-dense slab, tiled grid).
    x2 = jax.random.normal(jax.random.PRNGKey(1), (4, 8, 32, 32), dtype=jnp.float32)
    y2 = jax.block_until_ready(mul_pallas(x2, weight))
    assert jnp.allclose(y2, x2 * jnp.float32(weight), atol=1e-6, rtol=1e-6)

    # Awkward element count (not a multiple of 128): Pallas prefix + jnp tail.
    x3 = jax.random.normal(jax.random.PRNGKey(2), (5, 13, 17, 19), dtype=jnp.float32)
    y3 = jax.block_until_ready(mul_pallas(x3, weight))
    assert jnp.allclose(y3, x3 * jnp.float32(weight), atol=1e-6, rtol=1e-6)

    print("KERNEL_OK")
</pallas_src>

<mosaic_0001>
module attributes {stable_mosaic.version = 11 : i64} {
  func.func @_mul_kernel(%arg0: i32, %arg1: memref<1x1xf32, #tpu.memory_space<smem>>, %arg2: memref<8x4096xf32, #tpu.memory_space<vmem>>, %arg3: memref<8x4096xf32, #tpu.memory_space<vmem>>) attributes {dimension_semantics = [#tpu.dimension_semantics<parallel>], iteration_bounds = array<i64: 1>, scalar_prefetch = 0 : i64, scratch_operands = 0 : i64, tpu.core_type = #tpu.core_type<tc>, window_params = [{transform_indices = @transform_0, window_bounds = array<i64: 1, 1>}, {transform_indices = @transform_1, window_bounds = array<i64: 8, 4096>}, {transform_indices = @transform_2, window_bounds = array<i64: 8, 4096>}]} {
    %c0 = arith.constant 0 : index
    %c0_0 = arith.constant 0 : index
    %0 = vector.load %arg2[%c0, %c0_0] : memref<8x4096xf32, #tpu.memory_space<vmem>>, vector<8x4096xf32>
    %c0_1 = arith.constant 0 : index
    %c0_2 = arith.constant 0 : index
    %1 = memref.load %arg1[%c0_1, %c0_2] : memref<1x1xf32, #tpu.memory_space<smem>>
    %2 = vector.broadcast %1 : f32 to vector<8x4096xf32>
    %3 = arith.mulf %0, %2 : vector<8x4096xf32>
    %c0_3 = arith.constant 0 : index
    %c0_4 = arith.constant 0 : index
    %4 = vector.load %arg3[%c0_3, %c0_4] : memref<8x4096xf32, #tpu.memory_space<vmem>>, vector<8x4096xf32>
    tpu.vector_store %arg3[%c0_3, %c0_4], %3 {strides = array<i32>} : memref<8x4096xf32, #tpu.memory_space<vmem>>, vector<8x4096xf32>,
    return
  }
  func.func @transform_0(%arg0: i32) -> (i32, i32) {
    %c0_i32 = arith.constant 0 : i32
    %c0_i32_0 = arith.constant 0 : i32
    %c0_i32_1 = arith.constant 0 : i32
    return %c0_i32, %c0_i32_0 : i32, i32
  }
  func.func @transform_1(%arg0: i32) -> (i32, i32) {
    %c0_i32 = arith.constant 0 : i32
    %c0_i32_0 = arith.constant 0 : i32
    return %arg0, %c0_i32 : i32, i32
  }
  func.func @transform_2(%arg0: i32) -> (i32, i32) {
    %c0_i32 = arith.constant 0 : i32
    %c0_i32_0 = arith.constant 0 : i32
    return %arg0, %c0_i32 : i32, i32
  }
}

</mosaic_0001>

<bundles_post_ra>
// kernel: tpu_custom_call.1
= control target key start
LH: loop header
LB: loop body
LE: loop exit
PB: predicated region body
PF: predicated region fallthrough
CT: control target
= control target key end

     0   :  { %8 = vsyncpa [#allocation4], 0  ;;  %s256_s0 = inlined_call_operand.<no memory space> [shape: f32[1,1], index: 0, kind: input, shape index: {}]   ;;  %s257_s1 = inlined_call_operand.hbm [shape: f32[8,4096], index: 1, kind: input, shape index: {}]   ;;  %s258_s2 = inlined_call_operand.hbm [shape: f32[8,4096], index: 2, kind: output, shape index: {}]  }
   0x1   :  { %9 = vsyncpa [#allocation5], 0  ;;  %s17_s11 = sshll.u32 %s257_s1, 4  ;;  %s196_s12 = smov [#allocation3]   ;;  %s18_s11 = int_to_ptr.hbm [resolvable:$true] %s17_s11 }
   0x2   :  { %s19_s13 = sshll.u32 %s196_s12, 4  ;;  %s20_s13 = int_to_ptr.vmem [resolvable:$true] %s19_s13 }
   0x3   :  { %22 = dma.hbm_to_vmem [thread:$0]  %s18_s11, 4096, %s20_s13, [#allocation4]  }
   0x4   :  { %192 = dma.done.wait [#allocation4], 4096  }
   0x5   :  { %193 = vsyncadd [#allocation4], 4294963200  ;;  %v219_v0 = vstv %s256_s0  ;;  %v27_v1 = vld [vmem:[#allocation3] sm:$0xff]  ;;  %v28_v2 = vld [vmem:[#allocation3 + $0x8] sm:$0xff]  ;;  %s197_s0 = smov [#allocation6]   ;;  %s132_s18 = sshll.u32 %s258_s2, 4  ;;  %s133_s18 = int_to_ptr.hbm [resolvable:$true] %s132_s18 }
   0x6   :  { %v29_v3 = vld [vmem:[#allocation3 + $0x10] sm:$0xff]  ;;  %v61_v4 = vmul.f32 %v219_v0, %v27_v1  ;;  %v62_v5 = vmul.f32 %v219_v0, %v28_v2  ;;  %v30_v7 = vld [vmem:[#allocation3 + $0x18] sm:$0xff]  ;;  %v31_v8 = vld [vmem:[#allocation3 + $0x20] sm:$0xff]  ;;  %s130_s1 = sshll.u32 %s197_s0, 4  ;;  %s131_s1 = int_to_ptr.vmem [resolvable:$true] %s130_s1 }
   0x7   :  { %v63_v6 = vmul.f32 %v219_v0, %v29_v3  ;;  %v32_v9 = vld [vmem:[#allocation3 + $0x28] sm:$0xff]  ;;  %v64_v10 = vmul.f32 %v219_v0, %v30_v7  ;;  %v33_v11 = vld [vmem:[#allocation3 + $0x30] sm:$0xff]  ;;  %v65_v12 = vmul.f32 %v219_v0, %v31_v8  ;;  %v34_v13 = vld [vmem:[#allocation3 + $0x38] sm:$0xff] }
   0x8   :  { %93 = vst [vmem:[#allocation6] sm:$0xff] %v61_v4  ;;  %v66_v14 = vmul.f32 %v219_v0, %v32_v9  ;;  %v35_v15 = vld [vmem:[#allocation3 + $0x40] sm:$0xff]  ;;  %v67_v16 = vmul.f32 %v219_v0, %v33_v11  ;;  %v36_v17 = vld [vmem:[#allocation3 + $0x48] sm:$0xff]  ;;  %v68_v18 = vmul.f32 %v219_v0, %v34_v13  ;;  %v37_v19 = vld [vmem:[#allocation3 + $0x50] sm:$0xff] }
   0x9   :  { %94 = vst [vmem:[#allocation6 + $0x8] sm:$0xff] %v62_v5  ;;  %v69_v20 = vmul.f32 %v219_v0, %v35_v15  ;;  %v38_v21 = vld [vmem:[#allocation3 + $0x58] sm:$0xff]  ;;  %v70_v22 = vmul.f32 %v219_v0, %v36_v17  ;;  %v39_v23 = vld [vmem:[#allocation3 + $0x60] sm:$0xff]  ;;  %v71_v24 = vmul.f32 %v219_v0, %v37_v19  ;;  %v40_v25 = vld [vmem:[#allocation3 + $0x68] sm:$0xff] }
   0xa   :  { %95 = vst [vmem:[#allocation6 + $0x10] sm:$0xff] %v63_v6  ;;  %v72_v26 = vmul.f32 %v219_v0, %v38_v21  ;;  %v41_v27 = vld [vmem:[#allocation3 + $0x70] sm:$0xff]  ;;  %v73_v28 = vmul.f32 %v219_v0, %v39_v23  ;;  %v42_v29 = vld [vmem:[#allocation3 + $0x78] sm:$0xff]  ;;  %v74_v30 = vmul.f32 %v219_v0, %v40_v25  ;;  %v43_v31 = vld [vmem:[#allocation3 + $0x80] sm:$0xff] }
   0xb   :  { %96 = vst [vmem:[#allocation6 + $0x18] sm:$0xff] %v64_v10  ;;  %v75_v32 = vmul.f32 %v219_v0, %v41_v27  ;;  %v44_v33 = vld [vmem:[#allocation3 + $0x88] sm:$0xff]  ;;  %v76_v34 = vmul.f32 %v219_v0, %v42_v29  ;;  %v45_v35 = vld [vmem:[#allocation3 + $0x90] sm:$0xff]  ;;  %v77_v36 = vmul.f32 %v219_v0, %v43_v31  ;;  %v46_v37 = vld [vmem:[#allocation3 + $0x98] sm:$0xff] }
   0xc   :  { %97 = vst [vmem:[#allocation6 + $0x20] sm:$0xff] %v65_v12  ;;  %v78_v38 = vmul.f32 %v219_v0, %v44_v33  ;;  %v47_v39 = vld [vmem:[#allocation3 + $0xa0] sm:$0xff]  ;;  %v79_v40 = vmul.f32 %v219_v0, %v45_v35  ;;  %v48_v41 = vld [vmem:[#allocation3 + $0xa8] sm:$0xff]  ;;  %v80_v42 = vmul.f32 %v219_v0, %v46_v37  ;;  %v49_v43 = vld [vmem:[#allocation3 + $0xb0] sm:$0xff] }
   0xd   :  { %98 = vst [vmem:[#allocation6 + $0x28] sm:$0xff] %v66_v14  ;;  %v81_v44 = vmul.f32 %v219_v0, %v47_v39  ;;  %v50_v45 = vld [vmem:[#allocation3 + $0xb8] sm:$0xff]  ;;  %v82_v46 = vmul.f32 %v219_v0, %v48_v41  ;;  %v51_v47 = vld [vmem:[#allocation3 + $0xc0] sm:$0xff]  ;;  %v83_v48 = vmul.f32 %v219_v0, %v49_v43  ;;  %v52_v49 = vld [vmem:[#allocation3 + $0xc8] sm:$0xff] }
   0xe   :  { %99 = vst [vmem:[#allocation6 + $0x30] sm:$0xff] %v67_v16  ;;  %v84_v50 = vmul.f32 %v219_v0, %v50_v45  ;;  %v53_v51 = vld [vmem:[#allocation3 + $0xd0] sm:$0xff]  ;;  %v85_v52 = vmul.f32 %v219_v0, %v51_v47  ;;  %v54_v53 = vld [vmem:[#allocation3 + $0xd8] sm:$0xff]  ;;  %v86_v54 = vmul.f32 %v219_v0, %v52_v49  ;;  %v55_v55 = vld [vmem:[#allocation3 + $0xe0] sm:$0xff] }
   0xf   :  { %100 = vst [vmem:[#allocation6 + $0x38] sm:$0xff] %v68_v18  ;;  %v87_v56 = vmul.f32 %v219_v0, %v53_v51  ;;  %v56_v57 = vld [vmem:[#allocation3 + $0xe8] sm:$0xff]  ;;  %v88_v58 = vmul.f32 %v219_v0, %v54_v53  ;;  %v57_v59 = vld [vmem:[#allocation3 + $0xf0] sm:$0xff]  ;;  %v89_v60 = vmul.f32 %v219_v0, %v55_v55  ;;  %v58_v61 = vld [vmem:[#allocation3 + $0xf8] sm:$0xff] }
  0x10   :  { %101 = vst [vmem:[#allocation6 + $0x40] sm:$0xff] %v69_v20  ;;  %v90_v62 = vmul.f32 %v219_v0, %v56_v57  ;;  %v91_v63 = vmul.f32 %v219_v0, %v57_v59  ;;  %v92_v1 = vmul.f32 %v219_v0, %v58_v61 }
  0x11   :  { %102 = vst [vmem:[#allocation6 + $0x48] sm:$0xff] %v70_v22 }
  0x12   :  { %103 = vst [vmem:[#allocation6 + $0x50] sm:$0xff] %v71_v24 }
  0x13   :  { %104 = vst [vmem:[#allocation6 + $0x58] sm:$0xff] %v72_v26 }
  0x14   :  { %105 = vst [vmem:[#allocation6 + $0x60] sm:$0xff] %v73_v28 }
  0x15   :  { %106 = vst [vmem:[#allocation6 + $0x68] sm:$0xff] %v74_v30 }
  0x16   :  { %107 = vst [vmem:[#allocation6 + $0x70] sm:$0xff] %v75_v32 }
  0x17   :  { %108 = vst [vmem:[#allocation6 + $0x78] sm:$0xff] %v76_v34 }
  0x18   :  { %109 = vst [vmem:[#allocation6 + $0x80] sm:$0xff] %v77_v36 }
  0x19   :  { %110 = vst [vmem:[#allocation6 + $0x88] sm:$0xff] %v78_v38 }
  0x1a   :  { %111 = vst [vmem:[#allocation6 + $0x90] sm:$0xff] %v79_v40 }
  0x1b   :  { %112 = vst [vmem:[#allocation6 + $0x98] sm:$0xff] %v80_v42 }
  0x1c   :  { %113 = vst [vmem:[#allocation6 + $0xa0] sm:$0xff] %v81_v44 }
  0x1d   :  { %114 = vst [vmem:[#allocation6 + $0xa8] sm:$0xff] %v82_v46 }
  0x1e   :  { %115 = vst [vmem:[#allocation6 + $0xb0] sm:$0xff] %v83_v48 }
  0x1f   :  { %116 = vst [vmem:[#allocation6 + $0xb8] sm:$0xff] %v84_v50 }
  0x20   :  { %117 = vst [vmem:[#allocation6 + $0xc0] sm:$0xff] %v85_v52 }
  0x21   :  { %118 = vst [vmem:[#allocation6 + $0xc8] sm:$0xff] %v86_v54 }
  0x22   :  { %119 = vst [vmem:[#allocation6 + $0xd0] sm:$0xff] %v87_v56 }
  0x23   :  { %120 = vst [vmem:[#allocation6 + $0xd8] sm:$0xff] %v88_v58 }
  0x24   :  { %121 = vst [vmem:[#allocation6 + $0xe0] sm:$0xff] %v89_v60 }
  0x25   :  { %122 = vst [vmem:[#allocation6 + $0xe8] sm:$0xff] %v90_v62 }
  0x26   :  { %123 = vst [vmem:[#allocation6 + $0xf0] sm:$0xff] %v91_v63 }
  0x27   :  { %124 = vst [vmem:[#allocation6 + $0xf8] sm:$0xff] %v92_v1 }
  0x28   :  { %135 = dma.vmem_to_hbm [thread:$0]  %s131_s1, 4096, %s133_s18, [#allocation5]  }
  0x29   :  { %194 = dma.done.wait [#allocation5], 4096  }
  0x2a   :  { %195 = vsyncadd [#allocation5], 4294963200 }
  0x2b   :  { %140 = vsyncpa [#allocation4], 1 }
  0x2c   :  { %141 = vsyncpa [#allocation5], 1 }

</bundles_post_ra>
